<compile_context>
chip_gen: v7x
topology: tpu7x:2x2x1
jax: 0.10.0
libtpu: 0.0.40
codegen_flags: <defaults>
</compile_context>

<pallas_src>
import functools
import math

import jax
import jax.numpy as jnp
from jax.experimental import pallas as pl
from jax.experimental.pallas import tpu as pltpu


_STEP_BYTES_TARGET = 4 << 20        # in-block + out-block bytes per grid step
_MAX_GROUPS_PER_BLOCK = 8           # bounds static unrolling / vreg pressure
_VMEM_LIMIT_CAP = 48 << 20          # safe on v7x (64 MiB/TC) and v5e/v6e (128 MiB)


def _cdiv(a, b):
    return -(-a // b)


def _pad_to(v, m):
    return _cdiv(v, m) * m


def _group_std_sum(x_ref, o_ref, base, group_sz, width, inv_g, inv_denom):
    """Copy one group's rows through and return the sum of per-element stds.

    Shifted one-pass variance (shift = the group's sample 0) over the group
    axis in f32: a single streaming read of the group's rows; only the running
    sum / sum-of-squares stay live.
    """
    x0 = x_ref[base:base + 1, :]                    # (1, width), original dtype
    o_ref[base:base + 1, 0:width] = x0              # copy-through row 0
    x0f = x0.astype(jnp.float32)
    s = jnp.zeros((1, width), jnp.float32)
    ss = jnp.zeros((1, width), jnp.float32)
    for j in range(1, group_sz):                    # static unroll (G is small)
        xj = x_ref[base + j:base + j + 1, :]
        o_ref[base + j:base + j + 1, 0:width] = xj  # copy-through row j
        y = xj.astype(jnp.float32) - x0f
        s = s + y
        ss = ss + y * y
    var = (ss - (s * s) * inv_g) * inv_denom
    std = jnp.sqrt(jnp.maximum(var, 0.0))
    return jnp.sum(std)


def _mbstd_full_kernel(x_ref, o_ref, *, group_sz, groups_per_blk, chw, hw,
                       inv_g, inv_denom, inv_chw):
    """Monolithic-CHW path: x block (rows, chw), out block (rows, chw+hw)."""
    for g in range(groups_per_blk):
        base = g * group_sz
        std_sum = _group_std_sum(x_ref, o_ref, base, group_sz, chw,
                                 inv_g, inv_denom)
        mean_std = std_sum * inv_chw
        # Lane-aligned unmasked store when chw % 128 == 0 and hw >= 128
        # (typical); otherwise a masked store (correct, slightly slower).
        o_ref[base:base + group_sz, chw:chw + hw] = jnp.broadcast_to(
            mean_std, (group_sz, hw)).astype(o_ref.dtype)


def _mbstd_tiled_kernel(x_ref, o_ref, acc_ref, *, group_sz, groups_per_blk,
                        ctile, n_chw_tiles, inv_g, inv_denom, inv_chw):
    """Column-tiled path for very large C*H*W.

    grid = (row_blocks, n_chw_tiles + tail_tiles).  The column axis is
    "arbitrary" (sequential); per-group std sums accumulate in SMEM across the
    column tiles and the trailing step(s) broadcast the finished mean std into
    the new channel's columns.
    """
    k = pl.program_id(1)

    @pl.when(k < n_chw_tiles)
    def _stats_and_copy():
        for g in range(groups_per_blk):
            part = _group_std_sum(x_ref, o_ref, g * group_sz, group_sz, ctile,
                                  inv_g, inv_denom)
            prev = jnp.where(k == 0, jnp.float32(0.0), acc_ref[g])
            acc_ref[g] = prev + part

    @pl.when(k >= n_chw_tiles)
    def _write_std_channel():
        for g in range(groups_per_blk):
            base = g * group_sz
            mean_std = acc_ref[g] * inv_chw
            o_ref[base:base + group_sz, :] = jnp.broadcast_to(
                mean_std, (group_sz, ctile)).astype(o_ref.dtype)


def _pick_rows_per_block(bs, group_sz, row_align, bytes_per_row, cap_bytes):
    """Largest sublane/group-aligned row count inside the byte budget,
    preferring >=2 (ideally an even number of) grid steps for v7x megacore."""
    cap_rows = max(row_align, _MAX_GROUPS_PER_BLOCK * group_sz)
    cands = [r for r in range(row_align, min(bs, cap_rows) + 1, row_align)
             if bs % r == 0 and r * bytes_per_row <= cap_bytes]
    if cands:
        def score(r):
            n_blocks = bs // r
            return (n_blocks >= 2, n_blocks % 2 == 0, r)
        return max(cands, key=score)
    if bs <= cap_rows and bs * bytes_per_row <= cap_bytes:
        return bs            # whole batch in one block (full-dim exemption)
    if row_align <= bs and row_align * bytes_per_row <= cap_bytes:
        return row_align     # non-dividing: edge row blocks are masked by Pallas
    return None


def _pick_col_tile(chw, rows, itemsize, cap_bytes):
    """Largest multiple-of-128 divisor of chw fitting the per-step byte budget."""
    budget_cols = max(128, (cap_bytes // (2 * rows * itemsize)) // 128 * 128)
    m = chw // 128
    best = 1
    for d in range(1, m + 1):
        if m % d == 0 and 128 * d <= budget_cols:
            best = d
    return 128 * best


def _vmem_limit(step_bytes):
    # Double-buffered in+out blocks plus compiler scratch headroom, derived
    # from the actual padded block bytes and capped for v7x's 64 MiB/TC VMEM.
    return int(min(max(2 * step_bytes + (6 << 20), 16 << 20), _VMEM_LIMIT_CAP))


def minibatch_stddev(x, group_sz=4, unbiased_std=False, *, force_col_tile=None):
    """MiniBatchStdDev forward: (bs, n_ch, h, w) -> (bs, n_ch+1, h, w), where
    the extra channel holds each group's mean (over C,H,W) per-element std."""
    bs, n_ch, h, w = x.shape
    if bs % group_sz != 0:
        raise ValueError("batch size must be divisible by group_sz")
    if unbiased_std and group_sz == 1:
        raise ValueError("unbiased std with group_sz == 1 divides by zero")

    hw = h * w
    chw = n_ch * hw
    out_w = chw + hw
    itemsize = jnp.dtype(x.dtype).itemsize
    sublane = max(8, 32 // itemsize)          # f32 -> 8, bf16 -> 16, int8 -> 32
    row_align = math.lcm(group_sz, sublane)

    inv_g = 1.0 / group_sz
    inv_denom = 1.0 / (group_sz - 1 if unbiased_std else group_sz)
    inv_chw = 1.0 / chw

    x2 = x.reshape(bs, chw)                   # free contiguous reshape
    cost = pl.CostEstimate(
        flops=bs * chw * (3 * (group_sz - 1) + 5),
        transcendentals=(bs // group_sz) * chw,        # sqrt per group element
        bytes_accessed=bs * (chw + out_w) * itemsize)

    use_tiled = force_col_tile is not None
    rows = None
    if not use_tiled:
        rows = _pick_rows_per_block(bs, group_sz, row_align,
                                    (chw + out_w) * itemsize, _STEP_BYTES_TARGET)
        if rows is None:
            if chw % 128 == 0:
                use_tiled = True
            else:
                # TODO(synk): huge chw that is not a multiple of 128 cannot use
                # the column-tiled path; fall back to one monolithic group block
                # (may exceed the VMEM cap for extreme shapes, v7x first).
                rows = row_align if bs >= row_align else bs

    if use_tiled:
        if force_col_tile is not None:
            ctile = int(force_col_tile)
            if ctile % 128 != 0 or chw % ctile != 0:
                raise ValueError(
                    "force_col_tile must be a multiple of 128 dividing C*H*W")
            rows = _pick_rows_per_block(bs, group_sz, row_align,
                                        2 * ctile * itemsize, _STEP_BYTES_TARGET)
            if rows is None:
                rows = row_align if bs >= row_align else bs
        else:
            rows = row_align if bs >= row_align else bs
            ctile = _pick_col_tile(chw, rows, itemsize, _STEP_BYTES_TARGET)

        groups_per_blk = rows // group_sz
        n_chw_tiles = chw // ctile
        n_tail = _cdiv(hw, ctile)
        step_bytes = 2 * _pad_to(rows, sublane) * ctile * itemsize

        kernel = functools.partial(
            _mbstd_tiled_kernel, group_sz=group_sz,
            groups_per_blk=groups_per_blk, ctile=ctile, n_chw_tiles=n_chw_tiles,
            inv_g=inv_g, inv_denom=inv_denom, inv_chw=inv_chw)

        out2 = pl.pallas_call(
            kernel,
            out_shape=jax.ShapeDtypeStruct((bs, out_w), x.dtype),
            grid=(_cdiv(bs, rows), n_chw_tiles + n_tail),
            in_specs=[pl.BlockSpec(
                (rows, ctile),
                lambda i, k: (i, jnp.minimum(k, n_chw_tiles - 1)))],
            out_specs=pl.BlockSpec((rows, ctile), lambda i, k: (i, k)),
            scratch_shapes=[pltpu.SMEM((groups_per_blk,), jnp.float32)],
            compiler_params=pltpu.CompilerParams(
                dimension_semantics=("parallel", "arbitrary"),
                vmem_limit_bytes=_vmem_limit(step_bytes)),
            cost_estimate=cost,
        )(x2)
    else:
        groups_per_blk = rows // group_sz
        step_bytes = (_pad_to(rows, sublane) * _pad_to(chw, 128) * itemsize
                      + _pad_to(rows, sublane) * _pad_to(out_w, 128) * itemsize)

        kernel = functools.partial(
            _mbstd_full_kernel, group_sz=group_sz,
            groups_per_blk=groups_per_blk, chw=chw, hw=hw,
            inv_g=inv_g, inv_denom=inv_denom, inv_chw=inv_chw)

        out2 = pl.pallas_call(
            kernel,
            out_shape=jax.ShapeDtypeStruct((bs, out_w), x.dtype),
            grid=(_cdiv(bs, rows),),
            in_specs=[pl.BlockSpec((rows, chw), lambda i: (i, 0))],
            out_specs=pl.BlockSpec((rows, out_w), lambda i: (i, 0)),
            compiler_params=pltpu.CompilerParams(
                dimension_semantics=("parallel",),
                vmem_limit_bytes=_vmem_limit(step_bytes)),
            cost_estimate=cost,
        )(x2)

    return out2.reshape(bs, n_ch + 1, h, w)


def _reference(x, group_sz=4, unbiased_std=False):
    bs, n_ch, h, w = x.shape
    xg = x.astype(jnp.float32).reshape(-1, group_sz, n_ch, h, w)
    ddof = 1 if unbiased_std else 0
    stds = jnp.std(xg, axis=1, ddof=ddof)
    mean_std = jnp.mean(stds, axis=(1, 2, 3))
    new_map = jnp.broadcast_to(
        jnp.repeat(mean_std, group_sz).reshape(bs, 1, 1, 1), (bs, 1, h, w))
    return jnp.concatenate([x.astype(jnp.float32), new_map], axis=1)


if __name__ == "__main__":
    keys = jax.random.split(jax.random.PRNGKey(0), 4)

    # 1) f32, monolithic path (bs=8 -> one 8-row block holding 2 groups).
    x = jax.random.normal(keys[0], (8, 4, 16, 16), jnp.float32) + 3.0
    out = jax.block_until_ready(minibatch_stddev(x, group_sz=4))
    assert out.shape == (8, 5, 16, 16)
    assert jnp.allclose(out, _reference(x, 4, False), atol=1e-5, rtol=1e-5)

    # 2) unbiased std.
    out_u = jax.block_until_ready(
        minibatch_stddev(x, group_sz=4, unbiased_std=True))
    assert jnp.allclose(out_u, _reference(x, 4, True), atol=1e-5, rtol=1e-5)

    # 3) column-tiled path (forced 256-wide tiles: 2 row blocks x 5 col steps,
    #    SMEM accumulators + tail step).
    xt = jax.random.normal(keys[1], (16, 4, 16, 16), jnp.float32) - 1.5
    out_t = jax.block_until_ready(
        minibatch_stddev(xt, group_sz=4, force_col_tile=256))
    assert jnp.allclose(out_t, _reference(xt, 4, False), atol=1e-5, rtol=1e-5)

    # 4) bf16 input: 16-row (sublane-aligned) block, exact copy-through,
    #    bf16-rounded std channel.
    xb = (jax.random.normal(keys[2], (16, 4, 16, 16), jnp.float32)
          + 2.0).astype(jnp.bfloat16)
    out_b = jax.block_until_ready(minibatch_stddev(xb, group_sz=4))
    assert out_b.dtype == jnp.bfloat16
    assert jnp.array_equal(out_b[:, :4].astype(jnp.float32),
                           xb.astype(jnp.float32))
    assert jnp.allclose(out_b.astype(jnp.float32), _reference(xb, 4, False),
                        atol=3e-2, rtol=3e-2)

    # 5) chw % 128 != 0 (masked-store path) with an odd channel count.
    xo = jax.random.normal(keys[3], (8, 3, 12, 12), jnp.float32) + 0.5
    out_o = jax.block_until_ready(minibatch_stddev(xo, group_sz=4))
    assert out_o.shape == (8, 4, 12, 12)
    assert jnp.allclose(out_o, _reference(xo, 4, False), atol=1e-5, rtol=1e-5)

    print("KERNEL_OK")
</pallas_src>

<mosaic_0001>
module attributes {stable_mosaic.version = 11 : i64} {
  func.func @_mbstd_full_kernel(%arg0: i32, %arg1: memref<8x1024xf32, #tpu.memory_space<vmem>>, %arg2: memref<8x1280xf32, #tpu.memory_space<vmem>>) attributes {dimension_semantics = [#tpu.dimension_semantics<parallel>], iteration_bounds = array<i64: 1>, scalar_prefetch = 0 : i64, scratch_operands = 0 : i64, tpu.core_type = #tpu.core_type<tc>, window_params = [{transform_indices = @transform_0, window_bounds = array<i64: 8, 1024>}, {transform_indices = @transform_1, window_bounds = array<i64: 8, 1280>}]} {
    %c0 = arith.constant 0 : index
    %c0_0 = arith.constant 0 : index
    %0 = vector.load %arg1[%c0, %c0_0] : memref<8x1024xf32, #tpu.memory_space<vmem>>, vector<1x1024xf32>
    %c0_1 = arith.constant 0 : index
    %c0_2 = arith.constant 0 : index
    %1 = vector.load %arg2[%c0_1, %c0_2] : memref<8x1280xf32, #tpu.memory_space<vmem>>, vector<1x1024xf32>
    tpu.vector_store %arg2[%c0_1, %c0_2], %0 {strides = array<i32>} : memref<8x1280xf32, #tpu.memory_space<vmem>>, vector<1x1024xf32>,
    %cst = arith.constant 0.000000e+00 : f32
    %2 = vector.broadcast %cst : f32 to vector<1x1024xf32>
    %cst_3 = arith.constant 0.000000e+00 : f32
    %3 = vector.broadcast %cst_3 : f32 to vector<1x1024xf32>
    %c1 = arith.constant 1 : index
    %c0_4 = arith.constant 0 : index
    %4 = vector.load %arg1[%c1, %c0_4] : memref<8x1024xf32, #tpu.memory_space<vmem>>, vector<1x1024xf32>
    %c1_5 = arith.constant 1 : index
    %c0_6 = arith.constant 0 : index
    %5 = vector.load %arg2[%c1_5, %c0_6] : memref<8x1280xf32, #tpu.memory_space<vmem>>, vector<1x1024xf32>
    tpu.vector_store %arg2[%c1_5, %c0_6], %4 {strides = array<i32>} : memref<8x1280xf32, #tpu.memory_space<vmem>>, vector<1x1024xf32>,
    %6 = arith.subf %4, %0 : vector<1x1024xf32>
    %7 = arith.addf %2, %6 : vector<1x1024xf32>
    %8 = arith.mulf %6, %6 : vector<1x1024xf32>
    %9 = arith.addf %3, %8 : vector<1x1024xf32>
    %c2 = arith.constant 2 : index
    %c0_7 = arith.constant 0 : index
    %10 = vector.load %arg1[%c2, %c0_7] : memref<8x1024xf32, #tpu.memory_space<vmem>>, vector<1x1024xf32>
    %c2_8 = arith.constant 2 : index
    %c0_9 = arith.constant 0 : index
    %11 = vector.load %arg2[%c2_8, %c0_9] : memref<8x1280xf32, #tpu.memory_space<vmem>>, vector<1x1024xf32>
    tpu.vector_store %arg2[%c2_8, %c0_9], %10 {strides = array<i32>} : memref<8x1280xf32, #tpu.memory_space<vmem>>, vector<1x1024xf32>,
    %12 = arith.subf %10, %0 : vector<1x1024xf32>
    %13 = arith.addf %7, %12 : vector<1x1024xf32>
    %14 = arith.mulf %12, %12 : vector<1x1024xf32>
    %15 = arith.addf %9, %14 : vector<1x1024xf32>
    %c3 = arith.constant 3 : index
    %c0_10 = arith.constant 0 : index
    %16 = vector.load %arg1[%c3, %c0_10] : memref<8x1024xf32, #tpu.memory_space<vmem>>, vector<1x1024xf32>
    %c3_11 = arith.constant 3 : index
    %c0_12 = arith.constant 0 : index
    %17 = vector.load %arg2[%c3_11, %c0_12] : memref<8x1280xf32, #tpu.memory_space<vmem>>, vector<1x1024xf32>
    tpu.vector_store %arg2[%c3_11, %c0_12], %16 {strides = array<i32>} : memref<8x1280xf32, #tpu.memory_space<vmem>>, vector<1x1024xf32>,
    %18 = arith.subf %16, %0 : vector<1x1024xf32>
    %19 = arith.addf %13, %18 : vector<1x1024xf32>
    %20 = arith.mulf %18, %18 : vector<1x1024xf32>
    %21 = arith.addf %15, %20 : vector<1x1024xf32>
    %22 = arith.mulf %19, %19 : vector<1x1024xf32>
    %cst_13 = arith.constant 2.500000e-01 : f32
    %23 = vector.broadcast %cst_13 : f32 to vector<1x1024xf32>
    %24 = arith.mulf %22, %23 : vector<1x1024xf32>
    %25 = arith.subf %21, %24 : vector<1x1024xf32>
    %cst_14 = arith.constant 2.500000e-01 : f32
    %26 = vector.broadcast %cst_14 : f32 to vector<1x1024xf32>
    %27 = arith.mulf %25, %26 : vector<1x1024xf32>
    %cst_15 = arith.constant 0.000000e+00 : f32
    %28 = vector.broadcast %cst_15 : f32 to vector<1x1024xf32>
    %29 = arith.maximumf %27, %28 : vector<1x1024xf32>
    %30 = math.sqrt %29 : vector<1x1024xf32>
    %31 = vector.shape_cast %30 : vector<1x1024xf32> to vector<1x1x1024xf32>
    %cst_16 = arith.constant dense<0.000000e+00> : vector<1xf32>
    %32 = vector.multi_reduction <add>, %31, %cst_16 [1, 2] : vector<1x1x1024xf32> to vector<1xf32>
    %33 = vector.shape_cast %32 : vector<1xf32> to vector<1x1x1xf32>
    %34 = vector.extract %33[0, 0, 0] : f32 from vector<1x1x1xf32>
    %cst_17 = arith.constant 9.765625E-4 : f32
    %35 = arith.mulf %34, %cst_17 : f32
    %36 = vector.broadcast %35 : f32 to vector<4x256xf32>
    %c0_18 = arith.constant 0 : index
    %c1024 = arith.constant 1024 : index
    %37 = vector.load %arg2[%c0_18, %c1024] : memref<8x1280xf32, #tpu.memory_space<vmem>>, vector<4x256xf32>
    tpu.vector_store %arg2[%c0_18, %c1024], %36 {strides = array<i32>} : memref<8x1280xf32, #tpu.memory_space<vmem>>, vector<4x256xf32>,
    %c4 = arith.constant 4 : index
    %c0_19 = arith.constant 0 : index
    %38 = vector.load %arg1[%c4, %c0_19] : memref<8x1024xf32, #tpu.memory_space<vmem>>, vector<1x1024xf32>
    %c4_20 = arith.constant 4 : index
    %c0_21 = arith.constant 0 : index
    %39 = vector.load %arg2[%c4_20, %c0_21] : memref<8x1280xf32, #tpu.memory_space<vmem>>, vector<1x1024xf32>
    tpu.vector_store %arg2[%c4_20, %c0_21], %38 {strides = array<i32>} : memref<8x1280xf32, #tpu.memory_space<vmem>>, vector<1x1024xf32>,
    %cst_22 = arith.constant 0.000000e+00 : f32
    %40 = vector.broadcast %cst_22 : f32 to vector<1x1024xf32>
    %cst_23 = arith.constant 0.000000e+00 : f32
    %41 = vector.broadcast %cst_23 : f32 to vector<1x1024xf32>
    %c5 = arith.constant 5 : index
    %c0_24 = arith.constant 0 : index
    %42 = vector.load %arg1[%c5, %c0_24] : memref<8x1024xf32, #tpu.memory_space<vmem>>, vector<1x1024xf32>
    %c5_25 = arith.constant 5 : index
    %c0_26 = arith.constant 0 : index
    %43 = vector.load %arg2[%c5_25, %c0_26] : memref<8x1280xf32, #tpu.memory_space<vmem>>, vector<1x1024xf32>
    tpu.vector_store %arg2[%c5_25, %c0_26], %42 {strides = array<i32>} : memref<8x1280xf32, #tpu.memory_space<vmem>>, vector<1x1024xf32>,
    %44 = arith.subf %42, %38 : vector<1x1024xf32>
    %45 = arith.addf %40, %44 : vector<1x1024xf32>
    %46 = arith.mulf %44, %44 : vector<1x1024xf32>
    %47 = arith.addf %41, %46 : vector<1x1024xf32>
    %c6 = arith.constant 6 : index
    %c0_27 = arith.constant 0 : index
    %48 = vector.load %arg1[%c6, %c0_27] : memref<8x1024xf32, #tpu.memory_space<vmem>>, vector<1x1024xf32>
    %c6_28 = arith.constant 6 : index
    %c0_29 = arith.constant 0 : index
    %49 = vector.load %arg2[%c6_28, %c0_29] : memref<8x1280xf32, #tpu.memory_space<vmem>>, vector<1x1024xf32>
    tpu.vector_store %arg2[%c6_28, %c0_29], %48 {strides = array<i32>} : memref<8x1280xf32, #tpu.memory_space<vmem>>, vector<1x1024xf32>,
    %50 = arith.subf %48, %38 : vector<1x1024xf32>
    %51 = arith.addf %45, %50 : vector<1x1024xf32>
    %52 = arith.mulf %50, %50 : vector<1x1024xf32>
    %53 = arith.addf %47, %52 : vector<1x1024xf32>
    %c7 = arith.constant 7 : index
    %c0_30 = arith.constant 0 : index
    %54 = vector.load %arg1[%c7, %c0_30] : memref<8x1024xf32, #tpu.memory_space<vmem>>, vector<1x1024xf32>
    %c7_31 = arith.constant 7 : index
    %c0_32 = arith.constant 0 : index
    %55 = vector.load %arg2[%c7_31, %c0_32] : memref<8x1280xf32, #tpu.memory_space<vmem>>, vector<1x1024xf32>
    tpu.vector_store %arg2[%c7_31, %c0_32], %54 {strides = array<i32>} : memref<8x1280xf32, #tpu.memory_space<vmem>>, vector<1x1024xf32>,
    %56 = arith.subf %54, %38 : vector<1x1024xf32>
    %57 = arith.addf %51, %56 : vector<1x1024xf32>
    %58 = arith.mulf %56, %56 : vector<1x1024xf32>
    %59 = arith.addf %53, %58 : vector<1x1024xf32>
    %60 = arith.mulf %57, %57 : vector<1x1024xf32>
    %cst_33 = arith.constant 2.500000e-01 : f32
    %61 = vector.broadcast %cst_33 : f32 to vector<1x1024xf32>
    %62 = arith.mulf %60, %61 : vector<1x1024xf32>
    %63 = arith.subf %59, %62 : vector<1x1024xf32>
    %cst_34 = arith.constant 2.500000e-01 : f32
    %64 = vector.broadcast %cst_34 : f32 to vector<1x1024xf32>
    %65 = arith.mulf %63, %64 : vector<1x1024xf32>
    %cst_35 = arith.constant 0.000000e+00 : f32
    %66 = vector.broadcast %cst_35 : f32 to vector<1x1024xf32>
    %67 = arith.maximumf %65, %66 : vector<1x1024xf32>
    %68 = math.sqrt %67 : vector<1x1024xf32>
    %69 = vector.shape_cast %68 : vector<1x1024xf32> to vector<1x1x1024xf32>
    %cst_36 = arith.constant dense<0.000000e+00> : vector<1xf32>
    %70 = vector.multi_reduction <add>, %69, %cst_36 [1, 2] : vector<1x1x1024xf32> to vector<1xf32>
    %71 = vector.shape_cast %70 : vector<1xf32> to vector<1x1x1xf32>
    %72 = vector.extract %71[0, 0, 0] : f32 from vector<1x1x1xf32>
    %cst_37 = arith.constant 9.765625E-4 : f32
    %73 = arith.mulf %72, %cst_37 : f32
    %74 = vector.broadcast %73 : f32 to vector<4x256xf32>
    %c4_38 = arith.constant 4 : index
    %c1024_39 = arith.constant 1024 : index
    %75 = vector.load %arg2[%c4_38, %c1024_39] : memref<8x1280xf32, #tpu.memory_space<vmem>>, vector<4x256xf32>
    tpu.vector_store %arg2[%c4_38, %c1024_39], %74 {strides = array<i32>} : memref<8x1280xf32, #tpu.memory_space<vmem>>, vector<4x256xf32>,
    return
  }
  func.func @transform_0(%arg0: i32) -> (i32, i32) {
    %c0_i32 = arith.constant 0 : i32
    %c0_i32_0 = arith.constant 0 : i32
    return %arg0, %c0_i32 : i32, i32
  }
  func.func @transform_1(%arg0: i32) -> (i32, i32) {
    %c0_i32 = arith.constant 0 : i32
    %c0_i32_0 = arith.constant 0 : i32
    return %arg0, %c0_i32 : i32, i32
  }
}

</mosaic_0001>

<bundles_post_ra>
// kernel: tpu_custom_call.1
= control target key start
LH: loop header
LB: loop body
LE: loop exit
PB: predicated region body
PF: predicated region fallthrough
CT: control target
= control target key end

     0   :  { %6 = vsyncpa [#allocation3], 0  ;;  %s397_s0 = inlined_call_operand.hbm [shape: f32[8,1024], index: 0, kind: input, shape index: {}]   ;;  %s398_s1 = inlined_call_operand.hbm [shape: f32[8,1280], index: 1, kind: output, shape index: {}]  }
   0x1   :  { %7 = vsyncpa [#allocation4], 0  ;;  %s335_s6 = smov [#allocation2]   ;;  %s287_s10 = scalar_lea.hbm %s397_s0, 1024 }
   0x2   :  { %s14_s7 = sshll.u32 %s335_s6, 4  ;;  %p288_p0 = scmp.ne.s32.totalorder %s397_s0, %s287_s10  ;;  %s15_s7 = int_to_ptr.vmem [resolvable:$true] %s14_s7 }
   0x3   :  { %p291_p1 = scmp.lt.u32.totalorder %s287_s10, %s397_s0 }
   0x5   :  { %p293_p2 = pnand %p291_p1, %p288_p0 }
   0x7   :  { %296 = shalt.err (!%p293_p2)
}
   0x8   :  { %s297_s15 = scalar_lea.vmem %s15_s7, 1024  ;;  %p302_p4 = scmp.lt.s32.totalorder %s15_s7, %s15_s7 }
   0x9   :  { %p298_p3 = scmp.ne.s32.totalorder %s15_s7, %s297_s15  ;;  %p303_p5 = scmp.lt.s32.totalorder %s297_s15, %s297_s15 }
   0xb   :  { %p304_p6 = por %p303_p5, %p302_p4 }
   0xd   :  { %p305_p7 = pnand %p304_p6, %p298_p3 }
   0xf   :  { %308 = shalt.err (!%p305_p7)
}
  0x10   :  { %17 = dma.hbm_to_vmem [thread:$0]  %s397_s0, 1024, %s15_s7, [#allocation3]  }
  0x11   :  { %331 = dma.done.wait [#allocation3], 1024  }
  0x12   :  { %332 = vsyncadd [#allocation3], 4294966272  ;;  %v21_v0 = vld [vmem:[#allocation2] ss:$8 sm:$0xf]  ;;  %v72_v53 = vlaneseq  ;;  %vm112_vm2 = vcmask 1040384  }
  0x13   :  { %v22_v1 = vld [vmem:[#allocation2] ss:$8 sm:$0xf0]  ;;  %v27_v3 = vld [vmem:[#allocation2 + $0x1] ss:$8 sm:$0xf] }
  0x14   :  { %v23_v2 = vor.u32 %v22_v1, %v21_v0  ;;  %v28_v4 = vld [vmem:[#allocation2 + $0x1] ss:$8 sm:$0xf0]  ;;  %v38_v6 = vld [vmem:[#allocation2 + $0x2] ss:$8 sm:$0xf] }
  0x15   :  { %v29_v5 = vor.u32 %v28_v4, %v27_v3  ;;  %v39_v7 = vld [vmem:[#allocation2 + $0x2] ss:$8 sm:$0xf0]  ;;  %v49_v9 = vld [vmem:[#allocation2 + $0x3] ss:$8 sm:$0xf] }
  0x16   :  { %v40_v8 = vor.u32 %v39_v7, %v38_v6  ;;  %v50_v10 = vld [vmem:[#allocation2 + $0x3] ss:$8 sm:$0xf0]  ;;  %24 = vst [vmem:[#allocation5] ss:$8 sm:$0xf] %v23_v2 }
  0x17   :  { %25 = vst [vmem:[#allocation5] ss:$8 sm:$0xf0] %v23_v2  ;;  %31 = vst [vmem:[#allocation5 + $0x1] ss:$8 sm:$0xf] %v29_v5  ;;  %v33_v11 = vsub.f32 %v29_v5, %v23_v2  ;;  %v51_v12 = vor.u32 %v50_v10, %v49_v9 }
  0x18   :  { %32 = vst [vmem:[#allocation5 + $0x1] ss:$8 sm:$0xf0] %v29_v5  ;;  %v142_v13 = vld [vmem:[#allocation2 + $0x4] ss:$8 sm:$0xf]  ;;  %v44_v15 = vsub.f32 %v40_v8, %v23_v2 }
  0x19   :  { %v143_v14 = vld [vmem:[#allocation2 + $0x4] ss:$8 sm:$0xf0]  ;;  %42 = vst [vmem:[#allocation5 + $0x2] ss:$8 sm:$0xf] %v40_v8  ;;  %v35_v19 = vmul.f32 %v33_v11, %v33_v11  ;;  %v55_v20 = vsub.f32 %v51_v12, %v23_v2 }
  0x1a   :  { %43 = vst [vmem:[#allocation5 + $0x2] ss:$8 sm:$0xf0] %v40_v8  ;;  %v144_v16 = vor.u32 %v143_v14, %v142_v13  ;;  %v149_v17 = vld [vmem:[#allocation2 + $0x5] ss:$8 sm:$0xf]  ;;  %v45_v24 = vadd.f32 %v44_v15, %v33_v11  ;;  %v46_v25 = vmul.f32 %v44_v15, %v44_v15 }
  0x1b   :  { %v150_v18 = vld [vmem:[#allocation2 + $0x5] ss:$8 sm:$0xf0]  ;;  %53 = vst [vmem:[#allocation5 + $0x3] ss:$8 sm:$0xf] %v51_v12  ;;  %v57_v29 = vmul.f32 %v55_v20, %v55_v20 }
  0x1c   :  { %54 = vst [vmem:[#allocation5 + $0x3] ss:$8 sm:$0xf0] %v51_v12  ;;  %v151_v21 = vor.u32 %v150_v18, %v149_v17  ;;  %v160_v22 = vld [vmem:[#allocation2 + $0x6] ss:$8 sm:$0xf]  ;;  %v47_v32 = vadd.f32 %v46_v25, %v35_v19  ;;  %v56_v33 = vadd.f32 %v55_v20, %v45_v24 }
  0x1d   :  { %v161_v23 = vld [vmem:[#allocation2 + $0x6] ss:$8 sm:$0xf0]  ;;  %146 = vst [vmem:[#allocation5 + $0x4] ss:$8 sm:$0xf] %v144_v16 }
  0x1e   :  { %147 = vst [vmem:[#allocation5 + $0x4] ss:$8 sm:$0xf0] %v144_v16  ;;  %v162_v26 = vor.u32 %v161_v23, %v160_v22  ;;  %v171_v27 = vld [vmem:[#allocation2 + $0x7] ss:$8 sm:$0xf]  ;;  %v155_v30 = vsub.f32 %v151_v21, %v144_v16  ;;  %v58_v37 = vadd.f32 %v57_v29, %v47_v32  ;;  %v59_v38 = vmul.f32 %v56_v33, %v56_v33 }
  0x1f   :  { %v172_v28 = vld [vmem:[#allocation2 + $0x7] ss:$8 sm:$0xf0]  ;;  %153 = vst [vmem:[#allocation5 + $0x5] ss:$8 sm:$0xf] %v151_v21 }
  0x20   :  { %154 = vst [vmem:[#allocation5 + $0x5] ss:$8 sm:$0xf0] %v151_v21  ;;  %v173_v31 = vor.u32 %v172_v28, %v171_v27  ;;  %164 = vst [vmem:[#allocation5 + $0x6] ss:$8 sm:$0xf] %v162_v26  ;;  %v166_v34 = vsub.f32 %v162_v26, %v144_v16  ;;  %v157_v35 = vmul.f32 %v155_v30, %v155_v30 }
  0x21   :  { %165 = vst [vmem:[#allocation5 + $0x6] ss:$8 sm:$0xf0] %v162_v26  ;;  %v60_v42 = vmul.f32 0.25, %v59_v38  ;;  %v359_v55 = vshrl.u32 %v72_v53, 7  ;;  %s336_s19 = smov [#allocation5]  }
  0x22   :  { %175 = vst [vmem:[#allocation5 + $0x7] ss:$8 sm:$0xf] %v173_v31  ;;  %176 = vst [vmem:[#allocation5 + $0x7] ss:$8 sm:$0xf0] %v173_v31  ;;  %v177_v36 = vsub.f32 %v173_v31, %v144_v16  ;;  %v167_v39 = vadd.f32 %v166_v34, %v155_v30  ;;  %v168_v40 = vmul.f32 %v166_v34, %v166_v34 }
  0x23   :  { %v61_v45 = vsub.f32 %v58_v37, %v60_v42  ;;  %v74_v58 = vsub.s32 0, %v359_v55  ;;  %v78_v59 = vsub.s32 1, %v359_v55  ;;  %v82_v61 = vsub.s32 2, %v359_v55  ;;  %s268_s20 = sshll.u32 %s336_s19, 4  ;;  %s269_s20 = int_to_ptr.vmem [resolvable:$true] %s268_s20 }
  0x24   :  { %v179_v41 = vmul.f32 %v177_v36, %v177_v36  ;;  %v169_v43 = vadd.f32 %v168_v40, %v157_v35  ;;  %v178_v44 = vadd.f32 %v177_v36, %v167_v39  ;;  %v86_v62 = vsub.s32 3, %v359_v55  ;;  %s309_s23 = scalar_lea.vmem %s269_s20, 1280  ;;  %p314_p9 = scmp.lt.s32.totalorder %s269_s20, %s269_s20 }
  0x25   :  { %v62_v48 = vmul.f32 0.25, %v61_v45  ;;  %v90_v0 = vsub.s32 4, %v359_v55  ;;  %v94_v2 = vsub.s32 5, %v359_v55  ;;  %v98_v8 = vsub.s32 6, %v359_v55  ;;  %p310_p8 = scmp.ne.s32.totalorder %s269_s20, %s309_s23  ;;  %p315_p10 = scmp.lt.s32.totalorder %s309_s23, %s309_s23 }
  0x26   :  { %v180_v46 = vadd.f32 %v179_v41, %v169_v43  ;;  %v181_v47 = vmul.f32 %v178_v44, %v178_v44  ;;  %v102_v9 = vsub.s32 7, %v359_v55 }
  0x27   :  { %v63_v50 = vmax.f32 %v62_v48, 0.0  ;;  %p316_p11 = por %p315_p10, %p314_p9 }
  0x28   :  { %v182_v49 = vmul.f32 0.25, %v181_v47 }
  0x29   :  { %283 = vrsqrt.f32 %v63_v50  ;;  %vm66_vm0 = vcmp.eq.f32.partialorder %v63_v50, inf  ;;  %v69_v57 = vand.u32 2147483648, %v63_v50  ;;  %vm68_vm1 = vcmp.eq.f32.partialorder %v63_v50, 0.0  ;;  %p317_p12 = pnand %p316_p11, %p310_p8 }
  0x2a   :  { %v183_v51 = vsub.f32 %v180_v46, %v182_v49 }
  0x2c   :  { %v184_v52 = vmul.f32 0.25, %v183_v51 }
  0x2e   :  { %v185_v54 = vmax.f32 %v184_v52, 0.0 }
  0x30   :  { %285 = vrsqrt.f32 %v185_v54  ;;  %vm188_vm3 = vcmp.eq.f32.partialorder %v185_v54, inf  ;;  %v191_v16 = vand.u32 2147483648, %v185_v54  ;;  %vm190_vm4 = vcmp.eq.f32.partialorder %v185_v54, 0.0 }
  0x33   :  { %v284_v56 = vpop.eup %283 }
  0x34   :  { %v65_v60 = vmul.f32 %v284_v56, %v63_v50 }
  0x36   :  { %v67_v63 = vsel %vm66_vm0, %v63_v50, %v65_v60 }
  0x37   :  { %v70_v1 = vsel %vm68_vm1, %v69_v57, %v67_v63 }
  0x38   :  { %v75_v3 = vrot.slane %v70_v1, %v74_v58  ;;  %v79_v4 = vrot.slane %v70_v1, %v78_v59  ;;  %v83_v5 = vrot.slane %v70_v1, %v82_v61  ;;  %v87_v6 = vrot.slane %v70_v1, %v86_v62 }
  0x39   :  { %v91_v10 = vrot.slane %v70_v1, %v90_v0  ;;  %v95_v14 = vrot.slane %v70_v1, %v94_v2  ;;  %v99_v19 = vrot.slane %v70_v1, %v98_v8  ;;  %v103_v23 = vrot.slane %v70_v1, %v102_v9 }
  0x3a   :  { %v286_v7 = vpop.eup %285  ;;  %v113_v11 = vsel %vm112_vm2, %v75_v3, 0.0  ;;  %v114_v12 = vsel %vm112_vm2, %v79_v4, 0.0  ;;  %v116_v13 = vsel %vm112_vm2, %v83_v5, 0.0  ;;  %v118_v17 = vsel %vm112_vm2, %v87_v6, 0.0 }
  0x3b   :  { %v115_v15 = vadd.f32 %v114_v12, %v113_v11  ;;  %v187_v18 = vmul.f32 %v286_v7, %v185_v54  ;;  %v120_v21 = vsel %vm112_vm2, %v91_v10, 0.0  ;;  %v122_v25 = vsel %vm112_vm2, %v95_v14, 0.0 }
  0x3c   :  { %v124_v32 = vsel %vm112_vm2, %v99_v19, 0.0  ;;  %v126_v39 = vsel %vm112_vm2, %v103_v23, 0.0 }
  0x3d   :  { %v117_v20 = vadd.f32 %v116_v13, %v115_v15  ;;  %v189_v22 = vsel %vm188_vm3, %v185_v54, %v187_v18 }
  0x3e   :  { %v192_v26 = vsel %vm190_vm4, %v191_v16, %v189_v22 }
  0x3f   :  { %v119_v24 = vadd.f32 %v118_v17, %v117_v20  ;;  %v197_v27 = vrot.slane %v192_v26, %v74_v58  ;;  %v201_v28 = vrot.slane %v192_v26, %v78_v59  ;;  %v205_v29 = vrot.slane %v192_v26, %v82_v61 }
  0x40   :  { %v209_v30 = vrot.slane %v192_v26, %v86_v62  ;;  %v213_v33 = vrot.slane %v192_v26, %v90_v0  ;;  %v217_v40 = vrot.slane %v192_v26, %v94_v2  ;;  %v221_v44 = vrot.slane %v192_v26, %v98_v8 }
  0x41   :  { %v121_v31 = vadd.f32 %v120_v21, %v119_v24  ;;  %v234_v34 = vsel %vm112_vm2, %v197_v27, 0.0  ;;  %v235_v35 = vsel %vm112_vm2, %v201_v28, 0.0  ;;  %v237_v36 = vsel %vm112_vm2, %v205_v29, 0.0 }
  0x42   :  { %v236_v38 = vadd.f32 %v235_v35, %v234_v34  ;;  %v239_v41 = vsel %vm112_vm2, %v209_v30, 0.0  ;;  %v241_v45 = vsel %vm112_vm2, %v213_v33, 0.0  ;;  %v225_v48 = vrot.slane %v192_v26, %v102_v9 }
  0x43   :  { %v123_v37 = vadd.f32 %v122_v25, %v121_v31  ;;  %v243_v49 = vsel %vm112_vm2, %v217_v40, 0.0  ;;  %v245_v51 = vsel %vm112_vm2, %v221_v44, 0.0 }
  0x44   :  { %v238_v43 = vadd.f32 %v237_v36, %v236_v38  ;;  %v247_v53 = vsel %vm112_vm2, %v225_v48, 0.0 }
  0x45   :  { %v125_v42 = vadd.f32 %v124_v32, %v123_v37 }
  0x46   :  { %v240_v47 = vadd.f32 %v239_v41, %v238_v43 }
  0x47   :  { %v127_v46 = vadd.f32 %v126_v39, %v125_v42 }
  0x48   :  { %v242_v50 = vadd.f32 %v241_v45, %v240_v47 }
  0x49   :  { %128 = vadd.xlane.f32.xlu0 %v127_v46 }
  0x4a   :  { %v244_v52 = vadd.f32 %v243_v49, %v242_v50 }
  0x4c   :  { %v246_v54 = vadd.f32 %v245_v51, %v244_v52 }
  0x4e   :  { %v248_v55 = vadd.f32 %v247_v53, %v246_v54 }
  0x50   :  { %249 = vadd.xlane.f32.xlu0 %v248_v55 }
  0xd6   :  { %v129_v56 = vpop.xlane.xlu0 %128 }
  0xd7   :  { %v130_v57 = vrot.slane %v129_v56, 4 }
  0xd9   :  { %v131_v58 = vadd.f32 %v130_v57, %v129_v56 }
  0xdb   :  { %v132_v59 = vrot.slane %v131_v58, 2 }
  0xdd   :  { %v133_v60 = vadd.f32 %v132_v59, %v131_v58  ;;  %v250_v61 = vpop.xlane.xlu0 %249 }
  0xde   :  { %v251_v62 = vrot.slane %v250_v61, 4 }
  0xdf   :  { %v134_v63 = vrot.slane %v133_v60, 1 }
  0xe0   :  { %v252_v0 = vadd.f32 %v251_v62, %v250_v61 }
  0xe1   :  { %v135_v1 = vadd.f32 %v134_v63, %v133_v60 }
  0xe2   :  { %v253_v2 = vrot.slane %v252_v0, 2 }
  0xe3   :  { %277 = vpush %v135_v1 }
  0xe4   :  { %v254_v3 = vadd.f32 %v253_v2, %v252_v0 }
  0xe6   :  { %v255_v4 = vrot.slane %v254_v3, 1 }
  0xe8   :  { %v256_v5 = vadd.f32 %v255_v4, %v254_v3 }
  0xea   :  { %279 = vpush %v256_v5 }
 0x114   :  { %s278_s0 = spop %277 }
 0x115   :  { %s137_s18 = smul.f32 0.0009765625, %s278_s0 }
 0x117   :  { %v138_v6 = vstv %s137_s18 }
 0x118   :  { %139 = vst [vmem:[#allocation5 + $0x40] sm:$0xf] %v138_v6  ;;  %140 = vst [vmem:[#allocation5 + $0x48] sm:$0xf] %v138_v6 }
 0x11b   :  { %s280_s21 = spop %279 }
 0x11c   :  { %s258_s22 = smul.f32 0.0009765625, %s280_s21 }
 0x11e   :  { %v259_v7 = vstv %s258_s22 }
 0x11f   :  { %260 = vst [vmem:[#allocation5 + $0x40] sm:$0xf0] %v259_v7  ;;  %261 = vst [vmem:[#allocation5 + $0x48] sm:$0xf0] %v259_v7 }
 0x120   :  { %320 = shalt.err (!%p317_p12)
}
 0x121   :  { %s321_s26 = scalar_lea.hbm %s398_s1, 1280 }
 0x122   :  { %p322_p13 = scmp.ne.s32.totalorder %s398_s1, %s321_s26  ;;  %p325_p0 = scmp.lt.u32.totalorder %s321_s26, %s398_s1 }
 0x124   :  { %p327_p1 = pnand %p325_p0, %p322_p13 }
 0x126   :  { %330 = shalt.err (!%p327_p1)
}
 0x127   :  { %271 = dma.vmem_to_hbm [thread:$0]  %s269_s20, 1280, %s398_s1, [#allocation4]  }
 0x128   :  { %333 = dma.done.wait [#allocation4], 1280  }
 0x129   :  { %334 = vsyncadd [#allocation4], 4294966016 }
 0x12a   :  { %275 = vsyncpa [#allocation3], 1 }
 0x12b   :  { %276 = vsyncpa [#allocation4], 1 }

</bundles_post_ra>
